<compile_context>
chip_gen: v6e
topology: v6e:2x2x1
jax: 0.10.0
libtpu: 0.0.40
codegen_flags: <defaults>
</compile_context>

<pallas_src>
import math
import functools

import jax
import jax.numpy as jnp
from jax.experimental import pallas as pl
from jax.experimental.pallas import tpu as pltpu


def _round_up(x, m):
    return ((x + m - 1) // m) * m


# ---------------------------------------------------------------------------
# Kernel 1: feature projection   support = x @ W   (computed once, row-tiled)
# ---------------------------------------------------------------------------
def _proj_kernel(x_ref, w_ref, sup_ref):
    sup_ref[...] = jnp.dot(
        x_ref[...], w_ref[...], preferred_element_type=jnp.float32
    ).astype(sup_ref.dtype)


# ---------------------------------------------------------------------------
# Kernel 2: aggregation   out = adj @ support + bias
#   grid = (row tiles [parallel], K tiles over adj columns [arbitrary])
#   The f32 output block is resident across K and accumulates in place.
# ---------------------------------------------------------------------------
def _agg_kernel(adj_ref, sup_ref, b_ref, o_ref):
    k = pl.program_id(1)

    @pl.when(k == 0)
    def _():
        # Initialize the resident output block with the (broadcast) bias.
        o_ref[...] = jnp.broadcast_to(b_ref[...], o_ref.shape)

    o_ref[...] += jnp.dot(
        adj_ref[...], sup_ref[...], preferred_element_type=jnp.float32
    )


@functools.partial(jax.jit, static_argnames=("row_tile", "k_tile", "use_bf16"))
def graph_convolution(x, adj, weight, bias=None, *, row_tile=256, k_tile=512,
                      use_bf16=True):
    n, f_in = x.shape
    f_out = weight.shape[1]
    assert adj.shape == (n, n)

    mm_dtype = jnp.bfloat16 if use_bf16 else jnp.float32
    out_dtype = jnp.float32

    # Lane-dense feature dims: pad F_in and F_out to multiples of 128.
    f_in_p = _round_up(f_in, 128)
    f_out_p = _round_up(f_out, 128)

    # Clamp tiles to the (padded) problem size, keeping 8/128 alignment.
    rt = min(row_tile, _round_up(n, 8))    # adj / out row tile        (mult of 8)
    kt = min(k_tile, _round_up(n, 128))    # adj col / support row tile (mult of 128)
    n_pad_m = _round_up(n, rt)             # adj rows, output rows
    n_pad_k = _round_up(n, kt)             # adj cols, x / support rows

    if bias is None:
        bias = jnp.zeros((f_out,), jnp.float32)

    # Zero-pad to the tile grid (zeros contribute nothing to the matmuls).
    x_p = jnp.pad(x.astype(mm_dtype),
                  ((0, n_pad_k - n), (0, f_in_p - f_in)))
    w_p = jnp.pad(weight.astype(mm_dtype),
                  ((0, f_in_p - f_in), (0, f_out_p - f_out)))
    adj_p = jnp.pad(adj.astype(mm_dtype),
                    ((0, n_pad_m - n), (0, n_pad_k - n)))
    b_p = jnp.pad(bias.reshape(1, -1).astype(jnp.float32),
                  ((0, 0), (0, f_out_p - f_out)))

    # --- projection: support = x @ W  (once) ---------------------------------
    support = pl.pallas_call(
        _proj_kernel,
        out_shape=jax.ShapeDtypeStruct((n_pad_k, f_out_p), mm_dtype),
        grid_spec=pltpu.PrefetchScalarGridSpec(
            num_scalar_prefetch=0,
            grid=(n_pad_k // kt,),
            in_specs=[
                pl.BlockSpec((kt, f_in_p), lambda i: (i, 0)),
                pl.BlockSpec((f_in_p, f_out_p), lambda i: (0, 0)),
            ],
            out_specs=pl.BlockSpec((kt, f_out_p), lambda i: (i, 0)),
        ),
        compiler_params=pltpu.CompilerParams(
            dimension_semantics=("parallel",)),
    )(x_p, w_p)

    # --- aggregation: out = adj @ support + bias  (row-tiled, K-tiled) -------
    out_p = pl.pallas_call(
        _agg_kernel,
        out_shape=jax.ShapeDtypeStruct((n_pad_m, f_out_p), out_dtype),
        grid_spec=pltpu.PrefetchScalarGridSpec(
            num_scalar_prefetch=0,
            grid=(n_pad_m // rt, n_pad_k // kt),
            in_specs=[
                pl.BlockSpec((rt, kt), lambda i, k: (i, k)),
                pl.BlockSpec((kt, f_out_p), lambda i, k: (k, 0)),
                pl.BlockSpec((1, f_out_p), lambda i, k: (0, 0)),
            ],
            out_specs=pl.BlockSpec((rt, f_out_p), lambda i, k: (i, 0)),
        ),
        compiler_params=pltpu.CompilerParams(
            dimension_semantics=("parallel", "arbitrary")),
    )(adj_p, support, b_p)

    return out_p[:n, :f_out]


def init_params(key, in_features, out_features, bias=True):
    """Deterministic equivalent of GraphConvolution.reset_parameters()."""
    stdv = 1.0 / math.sqrt(out_features)
    kw, kb = jax.random.split(key)
    weight = jax.random.uniform(
        kw, (in_features, out_features), jnp.float32, minval=-stdv, maxval=stdv
    )
    if bias:
        b = jax.random.uniform(
            kb, (out_features,), jnp.float32, minval=-stdv, maxval=stdv
        )
    else:
        b = None
    return weight, b


if __name__ == "__main__":
    key = jax.random.PRNGKey(0)
    k_x, k_adj, k_p = jax.random.split(key, 3)

    N = 512          # number of graph nodes
    F_IN = 64        # in_features  (padded to 128 lanes internally)
    F_OUT = 128      # out_features (already lane-dense)

    x = jax.random.normal(k_x, (N, F_IN), jnp.float32)
    adj_raw = jax.random.uniform(k_adj, (N, N), jnp.float32)
    adj = (adj_raw > 0.8).astype(jnp.float32)  # sparse-ish dense adjacency

    weight, bias = init_params(k_p, F_IN, F_OUT, bias=True)

    # k_tile=256 so the K (reduction) axis has >1 step and the in-place
    # accumulation path is exercised; defaults (256/512) are the large-N tiles.
    out = graph_convolution(x, adj, weight, bias, row_tile=256, k_tile=256)
    out = jax.block_until_ready(out)

    # Reference (pure f32). Kernel runs matmuls with bf16 inputs / f32
    # accumulation, so compare with a bf16-appropriate tolerance.
    ref = adj @ (x @ weight) + bias.reshape(1, -1)
    assert out.shape == (N, F_OUT)
    assert jnp.allclose(out, ref, atol=2.5e-1, rtol=2e-2)

    print("KERNEL_OK")
</pallas_src>

<mosaic_0001>
module attributes {stable_mosaic.version = 11 : i64} {
  func.func @_proj_kernel(%arg0: i32, %arg1: memref<256x128xbf16, #tpu.memory_space<vmem>>, %arg2: memref<128x128xbf16, #tpu.memory_space<vmem>>, %arg3: memref<256x128xbf16, #tpu.memory_space<vmem>>) attributes {dimension_semantics = [#tpu.dimension_semantics<parallel>], iteration_bounds = array<i64: 2>, scalar_prefetch = 0 : i64, scratch_operands = 0 : i64, tpu.core_type = #tpu.core_type<tc>, window_params = [{transform_indices = @transform_0, window_bounds = array<i64: 256, 128>}, {pipeline_mode = #tpu.pipeline_mode<synchronous>, transform_indices = @transform_1, window_bounds = array<i64: 128, 128>}, {transform_indices = @transform_2, window_bounds = array<i64: 256, 128>}]} {
    %c0 = arith.constant 0 : index
    %c0_0 = arith.constant 0 : index
    %0 = vector.load %arg1[%c0, %c0_0] : memref<256x128xbf16, #tpu.memory_space<vmem>>, vector<256x128xbf16>
    %c0_1 = arith.constant 0 : index
    %c0_2 = arith.constant 0 : index
    %1 = vector.load %arg2[%c0_1, %c0_2] : memref<128x128xbf16, #tpu.memory_space<vmem>>, vector<128x128xbf16>
    %cst = arith.constant dense<0.000000e+00> : vector<256x128xf32>
    %2 = tpu.matmul %0, %1, %cst {dimension_numbers = #tpu.dot_dimension_numbers<[1], [0], [0], [1], [0, 0, 1, 1], [], []>} : vector<256x128xbf16>, vector<128x128xbf16>, vector<256x128xf32> -> vector<256x128xf32>
    %3 = arith.truncf %2 : vector<256x128xf32> to vector<256x128xbf16>
    %c0_3 = arith.constant 0 : index
    %c0_4 = arith.constant 0 : index
    %4 = vector.load %arg3[%c0_3, %c0_4] : memref<256x128xbf16, #tpu.memory_space<vmem>>, vector<256x128xbf16>
    tpu.vector_store %arg3[%c0_3, %c0_4], %3 {strides = array<i32>} : memref<256x128xbf16, #tpu.memory_space<vmem>>, vector<256x128xbf16>,
    return
  }
  func.func @transform_0(%arg0: i32) -> (i32, i32) {
    %c0_i32 = arith.constant 0 : i32
    %c0_i32_0 = arith.constant 0 : i32
    return %arg0, %c0_i32 : i32, i32
  }
  func.func @transform_1(%arg0: i32) -> (i32, i32) {
    %c0_i32 = arith.constant 0 : i32
    %c0_i32_0 = arith.constant 0 : i32
    %c0_i32_1 = arith.constant 0 : i32
    return %c0_i32, %c0_i32_0 : i32, i32
  }
  func.func @transform_2(%arg0: i32) -> (i32, i32) {
    %c0_i32 = arith.constant 0 : i32
    %c0_i32_0 = arith.constant 0 : i32
    return %arg0, %c0_i32 : i32, i32
  }
}

module attributes {stable_mosaic.version = 11 : i64} {
  func.func @_agg_kernel(%arg0: i32, %arg1: i32, %arg2: memref<256x256xbf16, #tpu.memory_space<vmem>>, %arg3: memref<256x128xbf16, #tpu.memory_space<vmem>>, %arg4: memref<1x128xf32, #tpu.memory_space<vmem>>, %arg5: memref<256x128xf32, #tpu.memory_space<vmem>>) attributes {dimension_semantics = [#tpu.dimension_semantics<parallel>, #tpu.dimension_semantics<arbitrary>], iteration_bounds = array<i64: 2, 2>, scalar_prefetch = 0 : i64, scratch_operands = 0 : i64, tpu.core_type = #tpu.core_type<tc>, window_params = [{transform_indices = @transform_0, window_bounds = array<i64: 256, 256>}, {transform_indices = @transform_1, window_bounds = array<i64: 256, 128>}, {pipeline_mode = #tpu.pipeline_mode<synchronous>, transform_indices = @transform_2, window_bounds = array<i64: 1, 128>}, {transform_indices = @transform_3, window_bounds = array<i64: 256, 128>}]} {
    %c0_i32 = arith.constant 0 : i32
    %0 = arith.cmpi eq, %arg1, %c0_i32 : i32
    %1 = arith.extui %0 : i1 to i32
    %c0_i32_0 = arith.constant 0 : i32
    %2 = arith.cmpi ne, %1, %c0_i32_0 : i32
    scf.if %2 {
      %c0_8 = arith.constant 0 : index
      %c0_9 = arith.constant 0 : index
      %9 = vector.load %arg4[%c0_8, %c0_9] : memref<1x128xf32, #tpu.memory_space<vmem>>, vector<1x128xf32>
      %10 = vector.shape_cast %9 : vector<1x128xf32> to vector<1x128xf32>
      %11 = vector.broadcast %10 : vector<1x128xf32> to vector<256x128xf32>
      %c0_10 = arith.constant 0 : index
      %c0_11 = arith.constant 0 : index
      %12 = vector.load %arg5[%c0_10, %c0_11] : memref<256x128xf32, #tpu.memory_space<vmem>>, vector<256x128xf32>
      tpu.vector_store %arg5[%c0_10, %c0_11], %11 {strides = array<i32>} : memref<256x128xf32, #tpu.memory_space<vmem>>, vector<256x128xf32>,
    } else {
    }
    %c0 = arith.constant 0 : index
    %c0_1 = arith.constant 0 : index
    %3 = vector.load %arg5[%c0, %c0_1] : memref<256x128xf32, #tpu.memory_space<vmem>>, vector<256x128xf32>
    %c0_2 = arith.constant 0 : index
    %c0_3 = arith.constant 0 : index
    %4 = vector.load %arg2[%c0_2, %c0_3] : memref<256x256xbf16, #tpu.memory_space<vmem>>, vector<256x256xbf16>
    %c0_4 = arith.constant 0 : index
    %c0_5 = arith.constant 0 : index
    %5 = vector.load %arg3[%c0_4, %c0_5] : memref<256x128xbf16, #tpu.memory_space<vmem>>, vector<256x128xbf16>
    %cst = arith.constant dense<0.000000e+00> : vector<256x128xf32>
    %6 = tpu.matmul %4, %5, %cst {dimension_numbers = #tpu.dot_dimension_numbers<[1], [0], [0], [1], [0, 0, 1, 1], [], []>} : vector<256x256xbf16>, vector<256x128xbf16>, vector<256x128xf32> -> vector<256x128xf32>
    %7 = arith.addf %3, %6 : vector<256x128xf32>
    %c0_6 = arith.constant 0 : index
    %c0_7 = arith.constant 0 : index
    %8 = vector.load %arg5[%c0_6, %c0_7] : memref<256x128xf32, #tpu.memory_space<vmem>>, vector<256x128xf32>
    tpu.vector_store %arg5[%c0_6, %c0_7], %7 {strides = array<i32>} : memref<256x128xf32, #tpu.memory_space<vmem>>, vector<256x128xf32>,
    return
  }
  func.func @transform_0(%arg0: i32, %arg1: i32) -> (i32, i32) {
    %c0_i32 = arith.constant 0 : i32
    return %arg0, %arg1 : i32, i32
  }
  func.func @transform_1(%arg0: i32, %arg1: i32) -> (i32, i32) {
    %c0_i32 = arith.constant 0 : i32
    %c0_i32_0 = arith.constant 0 : i32
    return %arg1, %c0_i32 : i32, i32
  }
  func.func @transform_2(%arg0: i32, %arg1: i32) -> (i32, i32) {
    %c0_i32 = arith.constant 0 : i32
    %c0_i32_0 = arith.constant 0 : i32
    %c0_i32_1 = arith.constant 0 : i32
    return %c0_i32, %c0_i32_0 : i32, i32
  }
  func.func @transform_3(%arg0: i32, %arg1: i32) -> (i32, i32) {
    %c0_i32 = arith.constant 0 : i32
    %c0_i32_0 = arith.constant 0 : i32
    return %arg0, %c0_i32 : i32, i32
  }
}

</mosaic_0001>

<bundles_post_ra>
// kernel: graph_convolution.3
= control target key start
LH: loop header
LB: loop body
LE: loop exit
PB: predicated region body
PF: predicated region fallthrough
CT: control target
= control target key end

     0   :  { %8 = vsyncpa [#allocation4], 0  ;;  %s1984_s0 = inlined_call_operand.vmem [shape: bf16[512,512], index: 0, kind: input, shape index: {}]   ;;  %s1985_s1 = inlined_call_operand.vmem [shape: bf16[512,128], index: 1, kind: input, shape index: {}]   ;;  %s1986_s2 = inlined_call_operand.vmem [shape: f32[1,128], index: 2, kind: input, shape index: {}]   ;;  %s1987_s3 = inlined_call_operand.hbm [shape: f32[512,128], index: 3, kind: output, shape index: {}]  }
   0x1   :  { %10 = vsyncpa [#allocation4 + $0x1], 0  ;;  %s1585_s12 = smov 0   ;;  %s1587_s13 = smov 0  }
   0x2   :  { %s1589_s14 = smov 0   ;;  %s1591_s15 = smov 0  }
   0x3   :  { %s1593_s16 = smov 0   ;;  %s1595_s17 = smov 0  }
   0x4   :  { %s1597_s18 = smov 0   ;;  %s1599_s19 = smov 0  }
   0x5   :  { %s1601_s20 = smov 0   ;;  %s1603_s21 = smov 0  }
   0x6 LB: > { %s1100_s22 = sadd.s32 4294967295, %s1560_s21   ;;  %s1101_s23 = sadd.s32 4294967294, %s1560_s21   ;;  %s1560_s21 = sphi %s1603_s21, %s16_s21   ;;  %s1556_s20 = sphi %s1601_s20, %s1999_s20   ;;  %s1552_s19 = sphi %s1599_s19, %s1998_s19   ;;  %s1548_s18 = sphi %s1597_s18, %s1997_s18   ;;  %s1544_s17 = sphi %s1595_s17, %s1996_s17   ;;  %s1540_s16 = sphi %s1593_s16, %s1995_s16   ;;  %s1536_s15 = sphi %s1591_s15, %s1994_s15   ;;  %s1532_s14 = sphi %s1589_s14, %s1993_s14   ;;  %s1528_s13 = sphi %s1587_s13, %s1992_s13   ;;  %s1524_s12 = sphi %s1585_s12, %s1991_s12  }
   0x7   : > { %s25_s24 = sadd.s32 1, %s1552_s19  ;;  %s28_s25 = sadd.s32 1, %s1556_s20 }
   0x8   : > { %p26_p0 = scmp.ge.s32.totalorder %s25_s24, 2  ;;  %s37_s26 = sadd.s32 1, %s1540_s16 }
   0x9   : > { %p44_p1 = scmp.ne.s32.totalorder %s1540_s16, %s1536_s15  ;;  %p45_p2 = scmp.eq.s32.totalorder %s1560_s21, 0 }
   0xa   : > { %s2001_s24 = smov (%p26_p0, %s25_s24), 0  ;;  %s2003_s25 = smov (!%p26_p0, %s28_s25), %s1556_s20 }
   0xb   : > { %s33_s27 = ssub.s32 %s1552_s19, %s2001_s24  ;;  %p1648_p3 = por %p45_p2, %p44_p1 }
   0xc   : > { %p30_p4 = scmp.ge.s32.totalorder %s2003_s25, 2  ;;  %s110_s29 = sadd.s32 1, %s1532_s14 }
   0xd   : > { %p120_p5 = scmp.ne.s32.totalorder %s1532_s14, %s1528_s13  ;;  %p121_p6 = scmp.eq.s32.totalorder %s1100_s22, 3 }
   0xe   : > { %s2005_s25 = smov (%p30_p4, %s2003_s25), 0  ;;  %p126_p8 = scmp.ne.s32.totalorder %s1528_s13, %s1524_s12 }
   0xf   : > { %p1657_p7 = por %p121_p6, %p120_p5  ;;  %s32_s4 = ssub.s32 %s1556_s20, %s2005_s25 }
  0x10   : > { %p127_p9 = scmp.eq.s32.totalorder %s1101_s23, 3  ;;  %s34_s5 = sor.u32 %s33_s27, %s32_s4 }
  0x11   : > { %p108_p10 = scmp.eq.s32.totalorder %s32_s4, 0  ;;  %p35_p11 = scmp.eq.s32.totalorder %s34_s5, 0 }
  0x12   : > { %p1665_p12 = por %p127_p9, %p126_p8  ;;  %p1103_p13 = scmp.ge.s32.totalorder %s1560_s21, 4 }
  0x13   : > { %s1670_s7 = scalar_select %p108_p10, %s1532_s14, %s110_s29  }
  0x14   : > { %s1673_s8 = scalar_select %p35_p11, %s1540_s16, %s37_s26  }
  0x15   : > { %146 = sbr.rel (%p1103_p13) target bundleno = 49 (0x31), region = 20 }
  0x1a   : > { %149 = sbr.rel (!%p1648_p3) target bundleno = 49 (0x31), region = 24  ;;  %s151_s9 = sand.u32 (%p1648_p3), 1, %s1540_s16  }
  0x1b   : > { %s1106_s10 = sshll.u32 (%p1648_p3), %s1552_s19, 1  ;;  %s1104_s11 = sshll.u32 (%p1648_p3), %s151_s9, 8 }
  0x1c   : > { %s1169_s22 = sshll.u32 (%p1648_p3), %s1556_s20, 7  ;;  %s1689_s28 = scalar_lea.vmem (%p1648_p3), [#allocation2], %s1104_s11 }
  0x1d   : > { %s157_s23 = sadd.s32 (%p1648_p3), %s1169_s22, %s1106_s10 }
  0x1e   : > { %s1108_s27 = sshll.u32 (%p1648_p3), %s157_s23, 2 }
  0x1f   : > { %s1684_s26 = scalar_lea.vmem %s1984_s0, %s1108_s27 }
  0x20   : > { %v250_v0 = vld [vmem:[%s1684_s26] sm:$0xff]  ;;  %v252_v1 = vld [vmem:[%s1684_s26 + $0x10] sm:$0xff] }
  0x21   : > { %v254_v2 = vld [vmem:[%s1684_s26 + $0x20] sm:$0xff]  ;;  %251 = vst [vmem:[%s1689_s28] sm:$0xff] %v250_v0  ;;  %253 = vst [vmem:[%s1689_s28 + $0x8] sm:$0xff] %v252_v1  ;;  %v256_v3 = vld [vmem:[%s1684_s26 + $0x30] sm:$0xff] }
  0x22   : > { %255 = vst [vmem:[%s1689_s28 + $0x10] sm:$0xff] %v254_v2  ;;  %v258_v4 = vld [vmem:[%s1684_s26 + $0x40] sm:$0xff]  ;;  %v260_v5 = vld [vmem:[%s1684_s26 + $0x50] sm:$0xff]  ;;  %257 = vst [vmem:[%s1689_s28 + $0x18] sm:$0xff] %v256_v3 }
  0x23   : > { %259 = vst [vmem:[%s1689_s28 + $0x20] sm:$0xff] %v258_v4  ;;  %261 = vst [vmem:[%s1689_s28 + $0x28] sm:$0xff] %v260_v5  ;;  %v262_v6 = vld [vmem:[%s1684_s26 + $0x60] sm:$0xff]  ;;  %v264_v7 = vld [vmem:[%s1684_s26 + $0x70] sm:$0xff] }
  0x24   : > { %v266_v8 = vld [vmem:[%s1684_s26 + $0x80] sm:$0xff]  ;;  %263 = vst [vmem:[%s1689_s28 + $0x30] sm:$0xff] %v262_v6  ;;  %265 = vst [vmem:[%s1689_s28 + $0x38] sm:$0xff] %v264_v7  ;;  %v268_v9 = vld [vmem:[%s1684_s26 + $0x90] sm:$0xff] }
  0x25   : > { %267 = vst [vmem:[%s1689_s28 + $0x40] sm:$0xff] %v266_v8  ;;  %v270_v10 = vld [vmem:[%s1684_s26 + $0xa0] sm:$0xff]  ;;  %v272_v11 = vld [vmem:[%s1684_s26 + $0xb0] sm:$0xff]  ;;  %269 = vst [vmem:[%s1689_s28 + $0x48] sm:$0xff] %v268_v9 }
  0x26   : > { %271 = vst [vmem:[%s1689_s28 + $0x50] sm:$0xff] %v270_v10  ;;  %273 = vst [vmem:[%s1689_s28 + $0x58] sm:$0xff] %v272_v11  ;;  %v274_v12 = vld [vmem:[%s1684_s26 + $0xc0] sm:$0xff]  ;;  %v276_v13 = vld [vmem:[%s1684_s26 + $0xd0] sm:$0xff] }
  0x27   : > { %v278_v14 = vld [vmem:[%s1684_s26 + $0xe0] sm:$0xff]  ;;  %275 = vst [vmem:[%s1689_s28 + $0x60] sm:$0xff] %v274_v12  ;;  %277 = vst [vmem:[%s1689_s28 + $0x68] sm:$0xff] %v276_v13  ;;  %v280_v15 = vld [vmem:[%s1684_s26 + $0xf0] sm:$0xff] }
  0x28   : > { %279 = vst [vmem:[%s1689_s28 + $0x70] sm:$0xff] %v278_v14  ;;  %v282_v16 = vld [vmem:[%s1684_s26 + $0x100] sm:$0xff]  ;;  %v284_v17 = vld [vmem:[%s1684_s26 + $0x110] sm:$0xff]  ;;  %281 = vst [vmem:[%s1689_s28 + $0x78] sm:$0xff] %v280_v15 }
  0x29   : > { %283 = vst [vmem:[%s1689_s28 + $0x80] sm:$0xff] %v282_v16  ;;  %285 = vst [vmem:[%s1689_s28 + $0x88] sm:$0xff] %v284_v17  ;;  %v286_v18 = vld [vmem:[%s1684_s26 + $0x120] sm:$0xff]  ;;  %v288_v19 = vld [vmem:[%s1684_s26 + $0x130] sm:$0xff] }
  0x2a   : > { %v290_v20 = vld [vmem:[%s1684_s26 + $0x140] sm:$0xff]  ;;  %287 = vst [vmem:[%s1689_s28 + $0x90] sm:$0xff] %v286_v18  ;;  %289 = vst [vmem:[%s1689_s28 + $0x98] sm:$0xff] %v288_v19  ;;  %v292_v21 = vld [vmem:[%s1684_s26 + $0x150] sm:$0xff] }
  0x2b   : > { %291 = vst [vmem:[%s1689_s28 + $0xa0] sm:$0xff] %v290_v20  ;;  %v294_v22 = vld [vmem:[%s1684_s26 + $0x160] sm:$0xff]  ;;  %v296_v23 = vld [vmem:[%s1684_s26 + $0x170] sm:$0xff]  ;;  %293 = vst [vmem:[%s1689_s28 + $0xa8] sm:$0xff] %v292_v21 }
  0x2c   : > { %295 = vst [vmem:[%s1689_s28 + $0xb0] sm:$0xff] %v294_v22  ;;  %297 = vst [vmem:[%s1689_s28 + $0xb8] sm:$0xff] %v296_v23  ;;  %v298_v24 = vld [vmem:[%s1684_s26 + $0x180] sm:$0xff]  ;;  %v300_v25 = vld [vmem:[%s1684_s26 + $0x190] sm:$0xff] }
  0x2d   : > { %v302_v26 = vld [vmem:[%s1684_s26 + $0x1a0] sm:$0xff]  ;;  %299 = vst [vmem:[%s1689_s28 + $0xc0] sm:$0xff] %v298_v24  ;;  %301 = vst [vmem:[%s1689_s28 + $0xc8] sm:$0xff] %v300_v25  ;;  %v304_v27 = vld [vmem:[%s1684_s26 + $0x1b0] sm:$0xff] }
  0x2e   : > { %303 = vst [vmem:[%s1689_s28 + $0xd0] sm:$0xff] %v302_v26  ;;  %v306_v28 = vld [vmem:[%s1684_s26 + $0x1c0] sm:$0xff]  ;;  %v308_v29 = vld [vmem:[%s1684_s26 + $0x1d0] sm:$0xff]  ;;  %305 = vst [vmem:[%s1689_s28 + $0xd8] sm:$0xff] %v304_v27 }
  0x2f   : > { %307 = vst [vmem:[%s1689_s28 + $0xe0] sm:$0xff] %v306_v28  ;;  %309 = vst [vmem:[%s1689_s28 + $0xe8] sm:$0xff] %v308_v29  ;;  %v310_v30 = vld [vmem:[%s1684_s26 + $0x1e0] sm:$0xff]  ;;  %v312_v31 = vld [vmem:[%s1684_s26 + $0x1f0] sm:$0xff] }
  0x30   : > { %311 = vst [vmem:[%s1689_s28 + $0xf0] sm:$0xff] %v310_v30  ;;  %313 = vst [vmem:[%s1689_s28 + $0xf8] sm:$0xff] %v312_v31 }
  0x31 PF: > { %p1109_p0 = scmp.ge.s32.totalorder %s1560_s21, 1  ;;  %p327_p1 = scmp.lt.s32.totalorder %s1560_s21, 5 }
  0x33   : > { %p328_p2 = pnand %p1109_p0, %p327_p1 }
  0x34   : > { %s334_s5 = sand.u32 (!%p328_p2), 1, %s1536_s15   ;;  %s359_s9 = sand.u32 (!%p328_p2), 1, %s1528_s13  }
  0x35   : > { %331 = sbr.rel (%p328_p2) target bundleno = 386 (0x182), region = 66  ;;  %s1110_s10 = sshll.u32 (!%p328_p2), %s334_s5, 8 }
  0x36   : > { %s1111_s11 = sshll.u32 (!%p328_p2), %s359_s9, 8  ;;  %s1112_s22 = sshll.u32 (!%p328_p2), %s1544_s17, 5 }
  0x37   : > { %p365_p3 = scmp.lt.s32.totalorder (!%p328_p2), %s1112_s22, 63  ;;  %s1764_s26 = scalar_lea.vmem (!%p328_p2), [#allocation2], %s1110_s10 }
  0x38   : > { %s1766_s28 = scalar_lea.vmem (!%p328_p2), [#allocation3], %s1111_s11  ;;  %p1114_p4 = scmp.ne.s32.totalorder (!%p328_p2), %s1544_s17, 0 }
  0x3a   : > { %s2007_s22 = smov (!%p365_p3, %s1112_s22), 63  ;;  %375 = sbr.rel (%p1114_p4) target bundleno = 80 (0x50), region = 74 }
  0x3b   : > { %s1113_s23 = sshll.u32 %s2007_s22, 2 }
  0x3c   : > { %s1762_s29 = scalar_lea.vmem %s1985_s1, %s1113_s23 }
  0x3f   : > { %v1115_v32 = vld [vmem:[%s1986_s2] ss:$0 sm:$0xff] }
  0x40   : > { %383 = vst [vmem:[%s1766_s28] sm:$0xff] %v1115_v32  ;;  %384 = vst [vmem:[%s1766_s28 + $0x8] sm:$0xff] %v1115_v32 }
  0x41   : > { %385 = vst [vmem:[%s1766_s28 + $0x10] sm:$0xff] %v1115_v32  ;;  %386 = vst [vmem:[%s1766_s28 + $0x18] sm:$0xff] %v1115_v32 }
  0x42   : > { %387 = vst [vmem:[%s1766_s28 + $0x20] sm:$0xff] %v1115_v32  ;;  %388 = vst [vmem:[%s1766_s28 + $0x28] sm:$0xff] %v1115_v32 }
  0x43   : > { %389 = vst [vmem:[%s1766_s28 + $0x30] sm:$0xff] %v1115_v32  ;;  %390 = vst [vmem:[%s1766_s28 + $0x38] sm:$0xff] %v1115_v32 }
  0x44   : > { %391 = vst [vmem:[%s1766_s28 + $0x40] sm:$0xff] %v1115_v32  ;;  %392 = vst [vmem:[%s1766_s28 + $0x48] sm:$0xff] %v1115_v32 }
  0x45   : > { %393 = vst [vmem:[%s1766_s28 + $0x50] sm:$0xff] %v1115_v32  ;;  %394 = vst [vmem:[%s1766_s28 + $0x58] sm:$0xff] %v1115_v32 }
  0x46   : > { %395 = vst [vmem:[%s1766_s28 + $0x60] sm:$0xff] %v1115_v32  ;;  %396 = vst [vmem:[%s1766_s28 + $0x68] sm:$0xff] %v1115_v32 }
  0x47   : > { %397 = vst [vmem:[%s1766_s28 + $0x70] sm:$0xff] %v1115_v32  ;;  %398 = vst [vmem:[%s1766_s28 + $0x78] sm:$0xff] %v1115_v32 }
  0x48   : > { %399 = vst [vmem:[%s1766_s28 + $0x80] sm:$0xff] %v1115_v32  ;;  %400 = vst [vmem:[%s1766_s28 + $0x88] sm:$0xff] %v1115_v32 }
  0x49   : > { %401 = vst [vmem:[%s1766_s28 + $0x90] sm:$0xff] %v1115_v32  ;;  %402 = vst [vmem:[%s1766_s28 + $0x98] sm:$0xff] %v1115_v32 }
  0x4a   : > { %403 = vst [vmem:[%s1766_s28 + $0xa0] sm:$0xff] %v1115_v32  ;;  %404 = vst [vmem:[%s1766_s28 + $0xa8] sm:$0xff] %v1115_v32 }
  0x4b   : > { %405 = vst [vmem:[%s1766_s28 + $0xb0] sm:$0xff] %v1115_v32  ;;  %406 = vst [vmem:[%s1766_s28 + $0xb8] sm:$0xff] %v1115_v32 }
  0x4c   : > { %407 = vst [vmem:[%s1766_s28 + $0xc0] sm:$0xff] %v1115_v32  ;;  %408 = vst [vmem:[%s1766_s28 + $0xc8] sm:$0xff] %v1115_v32 }
  0x4d   : > { %409 = vst [vmem:[%s1766_s28 + $0xd0] sm:$0xff] %v1115_v32  ;;  %410 = vst [vmem:[%s1766_s28 + $0xd8] sm:$0xff] %v1115_v32 }
  0x4e   : > { %411 = vst [vmem:[%s1766_s28 + $0xe0] sm:$0xff] %v1115_v32  ;;  %412 = vst [vmem:[%s1766_s28 + $0xe8] sm:$0xff] %v1115_v32 }
  0x4f   : > { %413 = vst [vmem:[%s1766_s28 + $0xf0] sm:$0xff] %v1115_v32  ;;  %414 = vst [vmem:[%s1766_s28 + $0xf8] sm:$0xff] %v1115_v32 }
  0x50 PF: > { %v1388_v33 = vld [vmem:[%s1762_s29 + $0x78] sm:$0xff]   ;;  %v1390_v35 = vld [vmem:[%s1762_s29 + $0x70] sm:$0xff]   ;;  %v1392_v37 = vld [vmem:[%s1762_s29 + $0x68] sm:$0xff]   ;;  %s1170_s17 = sshll.u32 %s1548_s18, 12  ;;  %s1006_s10 = sshll.u32 %s1766_s28, 4  ;;  %s1921_s10 = int_to_ptr.vmem [resolvable:$true] %s1006_s10 }
  0x51   : > { %v1389_v34 = vld [vmem:[%s1762_s29 + $0x38] sm:$0xff]   ;;  %1171 = vmatprep.subr.bf16.mxu0 %v1388_v33  ;;  %1283 = vmatprep.subr.bf16.mxu1 %v1388_v33  ;;  %v1391_v36 = vld [vmem:[%s1762_s29 + $0x30] sm:$0xff]   ;;  %v1393_v38 = vld [vmem:[%s1762_s29 + $0x28] sm:$0xff]   ;;  %s1919_s23 = scalar_lea.hbm %s1987_s3, %s1170_s17  ;;  %s1927_s18 = scalar_lea.sflag [#allocation4], %s359_s9 }
  0x52   : > { %1172 = vmatpush3.bf16.msra.mxu0 %v1389_v34  ;;  %1291 = vmatpush3.bf16.msra.mxu1 %v1389_v34  ;;  %v1394_v39 = vld [vmem:[%s1762_s29 + $0x60] sm:$0xff]   ;;  %v1396_v41 = vld [vmem:[%s1762_s29 + $0x58] sm:$0xff]   ;;  %v1398_v43 = vld [vmem:[%s1762_s29 + $0x50] sm:$0xff]   ;;  %s1452_s27 = scalar_lea.vmem %s1921_s10, 4096  ;;  %s1562_s4 = smov [#allocation3]  }
  0x53   : > { %1173 = vmatprep.subr.bf16.mxu0 %v1390_v35  ;;  %1284 = vmatprep.subr.bf16.mxu1 %v1390_v35  ;;  %v1395_v40 = vld [vmem:[%s1762_s29 + $0x20] sm:$0xff]   ;;  %v1397_v42 = vld [vmem:[%s1762_s29 + $0x18] sm:$0xff]   ;;  %v1399_v46 = vld [vmem:[%s1762_s29 + $0x10] sm:$0xff]   ;;  %p1453_p5 = scmp.ne.s32.totalorder %s1921_s10, %s1452_s27 }
  0x54   : > { %v1406_v44 = vld [vmem:[%s1764_s26 + $0x4] ss:$8 sps:$4 sm:$0xff]   ;;  %v1404_v51 = vld [vmem:[%s1764_s26] ss:$8 sps:$4 sm:$0xff]   ;;  %v1410_v53 = vld [vmem:[%s1764_s26 + $0x14] ss:$8 sps:$4 sm:$0xff]  }
  0x55   : > { %v1409_v45 = vld [vmem:[%s1764_s26 + $0x84] ss:$8 sps:$4 sm:$0xff]   ;;  %799 = vmatprep.mubr.bf16.mxu0 %v1406_v44  ;;  %v1407_v52 = vld [vmem:[%s1764_s26 + $0x80] ss:$8 sps:$4 sm:$0xff]   ;;  %v1412_v54 = vld [vmem:[%s1764_s26 + $0x94] ss:$8 sps:$4 sm:$0xff]   ;;  %p1454_p6 = pnand %p1453_p5, %p1657_p7 }
  0x56   : > { %1174 = vmatpush3.bf16.msra.mxu0 %v1391_v36  ;;  %1292 = vmatpush3.bf16.msra.mxu1 %v1391_v36  ;;  %v1400_v47 = vld [vmem:[%s1762_s29 + $0x48] sm:$0xff]   ;;  %v1402_v49 = vld [vmem:[%s1762_s29 + $0x40] sm:$0xff]   ;;  %v1414_v55 = vld [vmem:[%s1764_s26 + $0x10] ss:$8 sps:$4 sm:$0xff]  }
  0x57   : > { %1175 = vmatprep.subr.bf16.mxu0 %v1392_v37  ;;  %1285 = vmatprep.subr.bf16.mxu1 %v1392_v37  ;;  %v1401_v48 = vld [vmem:[%s1762_s29 + $0x8] sm:$0xff]   ;;  %v1403_v50 = vld [vmem:[%s1762_s29] sm:$0xff]   ;;  %v1415_v56 = vld [vmem:[%s1764_s26 + $0x90] ss:$8 sps:$4 sm:$0xff]   ;;  %p1455_p8 = pneg %p1454_p6  ;;  %s1456_s29 = sshll.u32 %s1562_s4, 4  ;;  %s1457_s29 = int_to_ptr.vmem [resolvable:$false] %s1456_s29 }
  0x58   : > { %863 = vmatprep.mubr.bf16.mxu1 %v1409_v45  ;;  %v1416_v57 = vld [vmem:[%s1764_s26 + $0x24] ss:$8 sps:$4 sm:$0xff]   ;;  %v1420_v59 = vld [vmem:[%s1764_s26 + $0x20] ss:$8 sps:$4 sm:$0xff]   ;;  %v1422_v61 = vld [vmem:[%s1764_s26 + $0x34] ss:$8 sps:$4 sm:$0xff]   ;;  %p1459_p9 = scmp.lt.s32.totalorder %s1921_s10, %s1457_s29 }
  0x59   : > { %v1418_v58 = vld [vmem:[%s1764_s26 + $0xa4] ss:$8 sps:$4 sm:$0xff]   ;;  %v1421_v60 = vld [vmem:[%s1764_s26 + $0xa0] ss:$8 sps:$4 sm:$0xff]   ;;  %v1424_v62 = vld [vmem:[%s1764_s26 + $0xb4] ss:$8 sps:$4 sm:$0xff]  }
  0x5a   : > { %1176 = vmatpush3.bf16.msra.mxu0 %v1393_v38  ;;  %1293 = vmatpush3.bf16.msra.mxu1 %v1393_v38  ;;  %v1426_v63 = vld [vmem:[%s1764_s26 + $0x30] ss:$8 sps:$4 sm:$0xff]   ;;  %v1428_v1 = vld [vmem:[%s1764_s26 + $0x44] ss:$8 sps:$4 sm:$0xff]   ;;  %v1432_v3 = vld [vmem:[%s1764_s26 + $0x40] ss:$8 sps:$4 sm:$0xff]  }
  0x5b   : > { %1177 = vmatprep.subr.bf16.mxu0 %v1394_v39  ;;  %1286 = vmatprep.subr.bf16.mxu1 %v1394_v39  ;;  %v1427_v0 = vld [vmem:[%s1764_s26 + $0xb0] ss:$8 sps:$4 sm:$0xff]   ;;  %v1430_v2 = vld [vmem:[%s1764_s26 + $0xc4] ss:$8 sps:$4 sm:$0xff]   ;;  %v1433_v4 = vld [vmem:[%s1764_s26 + $0xc0] ss:$8 sps:$4 sm:$0xff]  }
  0x5c   : > { %v1434_v5 = vld [vmem:[%s1764_s26 + $0x54] ss:$8 sps:$4 sm:$0xff]   ;;  %v1438_v7 = vld [vmem:[%s1764_s26 + $0x50] ss:$8 sps:$4 sm:$0xff]   ;;  %v1440_v9 = vld [vmem:[%s1764_s26 + $0x64] ss:$8 sps:$4 sm:$0xff]  }
  0x5d   : > { %v1436_v6 = vld [vmem:[%s1764_s26 + $0xd4] ss:$8 sps:$4 sm:$0xff]   ;;  %v1439_v8 = vld [vmem:[%s1764_s26 + $0xd0] ss:$8 sps:$4 sm:$0xff]   ;;  %v1442_v10 = vld [vmem:[%s1764_s26 + $0xe4] ss:$8 sps:$4 sm:$0xff]  }
  0x5e   : > { %1178 = vmatpush3.bf16.msra.mxu0 %v1395_v40  ;;  %1294 = vmatpush3.bf16.msra.mxu1 %v1395_v40  ;;  %v1444_v11 = vld [vmem:[%s1764_s26 + $0x60] ss:$8 sps:$4 sm:$0xff]   ;;  %v1446_v13 = vld [vmem:[%s1764_s26 + $0x74] ss:$8 sps:$4 sm:$0xff]   ;;  %v1450_v15 = vld [vmem:[%s1764_s26 + $0x70] ss:$8 sps:$4 sm:$0xff]  }
  0x5f   : > { %1179 = vmatprep.subr.bf16.mxu0 %v1396_v41  ;;  %1287 = vmatprep.subr.bf16.mxu1 %v1396_v41  ;;  %v1445_v12 = vld [vmem:[%s1764_s26 + $0xe0] ss:$8 sps:$4 sm:$0xff]   ;;  %v1448_v14 = vld [vmem:[%s1764_s26 + $0xf4] ss:$8 sps:$4 sm:$0xff]   ;;  %v1451_v16 = vld [vmem:[%s1764_s26 + $0xf0] ss:$8 sps:$4 sm:$0xff]  }
  0x60   : > { %v415_v19 = vld [vmem:[%s1766_s28] sm:$0xff]  ;;  %v416_v29 = vld [vmem:[%s1766_s28 + $0x8] sm:$0xff]  ;;  %v417_v39 = vld [vmem:[%s1766_s28 + $0x10] sm:$0xff]  ;;  %s1458_s26 = scalar_lea.vmem %s1457_s29, 8192 }
  0x61   : > { %v431_v21 = vld [vmem:[%s1766_s28 + $0x80] sm:$0xff]  ;;  %v432_v31 = vld [vmem:[%s1766_s28 + $0x88] sm:$0xff]  ;;  %v433_v41 = vld [vmem:[%s1766_s28 + $0x90] sm:$0xff]  ;;  %p1460_p10 = scmp.lt.s32.totalorder %s1458_s26, %s1452_s27 }
  0x62   : > { %1180 = vmatpush3.bf16.msra.mxu0 %v1397_v42  ;;  %1295 = vmatpush3.bf16.msra.mxu1 %v1397_v42 }
  0x63   : > { %1181 = vmatprep.subr.bf16.mxu0 %v1398_v43  ;;  %1288 = vmatprep.subr.bf16.mxu1 %v1398_v43  ;;  %p1461_p11 = por %p1460_p10, %p1459_p9 }
  0x65   : > { %p1462_p13 = pnand %p1461_p11, %p1455_p8 }
  0x66   : > { %1182 = vmatpush3.bf16.msra.mxu0 %v1399_v46  ;;  %1296 = vmatpush3.bf16.msra.mxu1 %v1399_v46 }
  0x67   : > { %1183 = vmatprep.subr.bf16.mxu0 %v1400_v47  ;;  %1289 = vmatprep.subr.bf16.mxu1 %v1400_v47 }
  0x6a   : > { %1184 = vmatpush3.bf16.msra.mxu0 %v1401_v48  ;;  %1297 = vmatpush3.bf16.msra.mxu1 %v1401_v48 }
  0x6b   : > { %1185 = vmatprep.subr.bf16.mxu0 %v1402_v49  ;;  %1290 = vmatprep.subr.bf16.mxu1 %v1402_v49  ;;  %v418_v49 = vld [vmem:[%s1766_s28 + $0x18] sm:$0xff] }
  0x6e   : > { %1186 = vmatpush3.bf16.msra.mxu0 %v1403_v50  ;;  %1298 = vmatpush3.bf16.msra.mxu1 %v1403_v50 }
  0x71   : > { %800 = vmatmul.mubr.bf16.vlgmr.msra.gmra.mxu0 %v1404_v51  ;;  %864 = vmatmul.mubr.bf16.vlgmr.msra.gmra.mxu1 %v1407_v52  ;;  %v434_v51 = vld [vmem:[%s1766_s28 + $0x98] sm:$0xff] }
  0x72   : > { %807 = vmatprep.mubr.bf16.mxu0 %v1410_v53  ;;  %871 = vmatprep.mubr.bf16.mxu1 %v1412_v54 }
  0x79   : > { %808 = vmatmul.mubr.bf16.gmra.mxu0 %v1414_v55  ;;  %872 = vmatmul.mubr.bf16.gmra.mxu1 %v1415_v56 }
  0x7a   : > { %815 = vmatprep.mubr.bf16.mxu0 %v1416_v57  ;;  %879 = vmatprep.mubr.bf16.mxu1 %v1418_v58 }
  0x81   : > { %816 = vmatmul.mubr.bf16.gmra.mxu0 %v1420_v59  ;;  %880 = vmatmul.mubr.bf16.gmra.mxu1 %v1421_v60  ;;  %v419_v59 = vld [vmem:[%s1766_s28 + $0x20] sm:$0xff] }
  0x82   : > { %823 = vmatprep.mubr.bf16.mxu0 %v1422_v61  ;;  %887 = vmatprep.mubr.bf16.mxu1 %v1424_v62  ;;  %v435_v61 = vld [vmem:[%s1766_s28 + $0xa0] sm:$0xff] }
  0x89   : > { %824 = vmatmul.mubr.bf16.gmra.mxu0 %v1426_v63  ;;  %888 = vmatmul.mubr.bf16.gmra.mxu1 %v1427_v0 }
  0x8a   : > { %831 = vmatprep.mubr.bf16.mxu0 %v1428_v1  ;;  %895 = vmatprep.mubr.bf16.mxu1 %v1430_v2 }
  0x91   : > { %832 = vmatmul.mubr.bf16.gmra.mxu0 %v1432_v3  ;;  %896 = vmatmul.mubr.bf16.gmra.mxu1 %v1433_v4 }
  0x92   : > { %839 = vmatprep.mubr.bf16.mxu0 %v1434_v5  ;;  %903 = vmatprep.mubr.bf16.mxu1 %v1436_v6  ;;  %v420_v5 = vld [vmem:[%s1766_s28 + $0x28] sm:$0xff] }
  0x99   : > { %840 = vmatmul.mubr.bf16.gmra.mxu0 %v1438_v7  ;;  %904 = vmatmul.mubr.bf16.gmra.mxu1 %v1439_v8  ;;  %v436_v7 = vld [vmem:[%s1766_s28 + $0xa8] sm:$0xff] }
  0x9a   : > { %847 = vmatprep.mubr.bf16.mxu0 %v1440_v9  ;;  %911 = vmatprep.mubr.bf16.mxu1 %v1442_v10 }
  0xa1   : > { %848 = vmatmul.mubr.bf16.gmra.mxu0 %v1444_v11  ;;  %912 = vmatmul.mubr.bf16.gmra.mxu1 %v1445_v12 }
  0xa2   : > { %855 = vmatprep.mubr.bf16.mxu0 %v1446_v13  ;;  %919 = vmatprep.mubr.bf16.mxu1 %v1448_v14 }
  0xa9   : > { %856 = vmatmul.mubr.bf16.gmra.mxu0 %v1450_v15  ;;  %920 = vmatmul.mubr.bf16.gmra.mxu1 %v1451_v16  ;;  %v421_v15 = vld [vmem:[%s1766_s28 + $0x30] sm:$0xff] }
 0x131   : > { %v1187_v17 = vpop.f32.mrf.mxu0  ;;  %v1235_v18 = vpop.f32.mrf.mxu1 }
 0x133   : > { %v1188_v20 = vpop.f32.mrf.mxu0  ;;  %v1236_v22 = vpop.f32.mrf.mxu1 }
 0x134   : > { %v1189_v23 = vadd.f32 %v1188_v20, %v1187_v17  ;;  %v1237_v24 = vadd.f32 %v1236_v22, %v1235_v18  ;;  %v437_v17 = vld [vmem:[%s1766_s28 + $0xb0] sm:$0xff] }
 0x135   : > { %v1190_v25 = vpop.f32.mrf.mxu0  ;;  %v1238_v26 = vpop.f32.mrf.mxu1 }
 0x136   : > { %v928_v27 = vadd.f32 %v1189_v23, %v415_v19  ;;  %v944_v28 = vadd.f32 %v1237_v24, %v431_v21 }
 0x137   : > { %v1191_v30 = vpop.f32.mrf.mxu0  ;;  %v1239_v32 = vpop.f32.mrf.mxu1 }
 0x138   : > { %960 = vst [vmem:[%s1766_s28] sm:$0xff] %v928_v27  ;;  %976 = vst [vmem:[%s1766_s28 + $0x80] sm:$0xff] %v944_v28  ;;  %v1192_v33 = vadd.f32 %v1191_v30, %v1190_v25  ;;  %v1240_v34 = vadd.f32 %v1239_v32, %v1238_v26  ;;  %v422_v25 = vld [vmem:[%s1766_s28 + $0x38] sm:$0xff] }
 0x139   : > { %v1193_v35 = vpop.f32.mrf.mxu0  ;;  %v1241_v36 = vpop.f32.mrf.mxu1  ;;  %v438_v27 = vld [vmem:[%s1766_s28 + $0xb8] sm:$0xff] }
 0x13a   : > { %v929_v37 = vadd.f32 %v1192_v33, %v416_v29  ;;  %v945_v38 = vadd.f32 %v1240_v34, %v432_v31 }
 0x13b   : > { %v1194_v40 = vpop.f32.mrf.mxu0  ;;  %v1242_v42 = vpop.f32.mrf.mxu1 }
 0x13c   : > { %961 = vst [vmem:[%s1766_s28 + $0x8] sm:$0xff] %v929_v37  ;;  %977 = vst [vmem:[%s1766_s28 + $0x88] sm:$0xff] %v945_v38  ;;  %v1195_v43 = vadd.f32 %v1194_v40, %v1193_v35  ;;  %v1243_v44 = vadd.f32 %v1242_v42, %v1241_v36  ;;  %v423_v35 = vld [vmem:[%s1766_s28 + $0x40] sm:$0xff] }
 0x13d   : > { %v1196_v45 = vpop.f32.mrf.mxu0  ;;  %v1244_v46 = vpop.f32.mrf.mxu1  ;;  %v439_v37 = vld [vmem:[%s1766_s28 + $0xc0] sm:$0xff] }
 0x13e   : > { %v930_v47 = vadd.f32 %v1195_v43, %v417_v39  ;;  %v946_v48 = vadd.f32 %v1243_v44, %v433_v41 }
 0x13f   : > { %v1197_v50 = vpop.f32.mrf.mxu0  ;;  %v1245_v52 = vpop.f32.mrf.mxu1 }
 0x140   : > { %962 = vst [vmem:[%s1766_s28 + $0x10] sm:$0xff] %v930_v47  ;;  %978 = vst [vmem:[%s1766_s28 + $0x90] sm:$0xff] %v946_v48  ;;  %v1198_v53 = vadd.f32 %v1197_v50, %v1196_v45  ;;  %v1246_v54 = vadd.f32 %v1245_v52, %v1244_v46  ;;  %v424_v45 = vld [vmem:[%s1766_s28 + $0x48] sm:$0xff] }
 0x141   : > { %v1199_v55 = vpop.f32.mrf.mxu0  ;;  %v1247_v56 = vpop.f32.mrf.mxu1  ;;  %v440_v47 = vld [vmem:[%s1766_s28 + $0xc8] sm:$0xff] }
 0x142   : > { %v931_v57 = vadd.f32 %v1198_v53, %v418_v49  ;;  %v947_v58 = vadd.f32 %v1246_v54, %v434_v51 }
 0x143   : > { %v1200_v60 = vpop.f32.mrf.mxu0  ;;  %v1248_v62 = vpop.f32.mrf.mxu1 }
 0x144   : > { %963 = vst [vmem:[%s1766_s28 + $0x18] sm:$0xff] %v931_v57  ;;  %979 = vst [vmem:[%s1766_s28 + $0x98] sm:$0xff] %v947_v58  ;;  %v1201_v63 = vadd.f32 %v1200_v60, %v1199_v55  ;;  %v1249_v0 = vadd.f32 %v1248_v62, %v1247_v56  ;;  %v425_v55 = vld [vmem:[%s1766_s28 + $0x50] sm:$0xff] }
 0x145   : > { %v1202_v1 = vpop.f32.mrf.mxu0  ;;  %v1250_v2 = vpop.f32.mrf.mxu1  ;;  %v441_v57 = vld [vmem:[%s1766_s28 + $0xd0] sm:$0xff] }
 0x146   : > { %v932_v3 = vadd.f32 %v1201_v63, %v419_v59  ;;  %v948_v4 = vadd.f32 %v1249_v0, %v435_v61 }
 0x147   : > { %v1203_v6 = vpop.f32.mrf.mxu0  ;;  %v1251_v8 = vpop.f32.mrf.mxu1 }
 0x148   : > { %964 = vst [vmem:[%s1766_s28 + $0x20] sm:$0xff] %v932_v3  ;;  %980 = vst [vmem:[%s1766_s28 + $0xa0] sm:$0xff] %v948_v4  ;;  %v1204_v9 = vadd.f32 %v1203_v6, %v1202_v1  ;;  %v1252_v10 = vadd.f32 %v1251_v8, %v1250_v2  ;;  %v426_v1 = vld [vmem:[%s1766_s28 + $0x58] sm:$0xff] }
 0x149   : > { %v1205_v11 = vpop.f32.mrf.mxu0  ;;  %v1253_v12 = vpop.f32.mrf.mxu1  ;;  %v442_v3 = vld [vmem:[%s1766_s28 + $0xd8] sm:$0xff] }
 0x14a   : > { %v933_v13 = vadd.f32 %v1204_v9, %v420_v5  ;;  %v949_v14 = vadd.f32 %v1252_v10, %v436_v7 }
 0x14b   : > { %v1206_v16 = vpop.f32.mrf.mxu0  ;;  %v1254_v18 = vpop.f32.mrf.mxu1 }
 0x14c   : > { %965 = vst [vmem:[%s1766_s28 + $0x28] sm:$0xff] %v933_v13  ;;  %981 = vst [vmem:[%s1766_s28 + $0xa8] sm:$0xff] %v949_v14  ;;  %v1207_v19 = vadd.f32 %v1206_v16, %v1205_v11  ;;  %v1255_v20 = vadd.f32 %v1254_v18, %v1253_v12  ;;  %v427_v11 = vld [vmem:[%s1766_s28 + $0x60] sm:$0xff] }
 0x14d   : > { %v1208_v21 = vpop.f32.mrf.mxu0  ;;  %v1256_v22 = vpop.f32.mrf.mxu1  ;;  %v443_v13 = vld [vmem:[%s1766_s28 + $0xe0] sm:$0xff] }
 0x14e   : > { %v934_v23 = vadd.f32 %v1207_v19, %v421_v15  ;;  %v950_v24 = vadd.f32 %v1255_v20, %v437_v17 }
 0x14f   : > { %v1209_v26 = vpop.f32.mrf.mxu0  ;;  %v1257_v28 = vpop.f32.mrf.mxu1 }
 0x150   : > { %966 = vst [vmem:[%s1766_s28 + $0x30] sm:$0xff] %v934_v23  ;;  %982 = vst [vmem:[%s1766_s28 + $0xb0] sm:$0xff] %v950_v24  ;;  %v1210_v29 = vadd.f32 %v1209_v26, %v1208_v21  ;;  %v1258_v30 = vadd.f32 %v1257_v28, %v1256_v22  ;;  %v428_v21 = vld [vmem:[%s1766_s28 + $0x68] sm:$0xff] }
 0x151   : > { %v1211_v31 = vpop.f32.mrf.mxu0  ;;  %v1259_v32 = vpop.f32.mrf.mxu1  ;;  %v444_v23 = vld [vmem:[%s1766_s28 + $0xe8] sm:$0xff] }
 0x152   : > { %v935_v33 = vadd.f32 %v1210_v29, %v422_v25  ;;  %v951_v34 = vadd.f32 %v1258_v30, %v438_v27 }
 0x153   : > { %v1212_v36 = vpop.f32.mrf.mxu0  ;;  %v1260_v38 = vpop.f32.mrf.mxu1 }
 0x154   : > { %967 = vst [vmem:[%s1766_s28 + $0x38] sm:$0xff] %v935_v33  ;;  %983 = vst [vmem:[%s1766_s28 + $0xb8] sm:$0xff] %v951_v34  ;;  %v1213_v39 = vadd.f32 %v1212_v36, %v1211_v31  ;;  %v1261_v40 = vadd.f32 %v1260_v38, %v1259_v32  ;;  %v429_v31 = vld [vmem:[%s1766_s28 + $0x70] sm:$0xff] }
 0x155   : > { %v1214_v41 = vpop.f32.mrf.mxu0  ;;  %v1262_v42 = vpop.f32.mrf.mxu1  ;;  %v445_v33 = vld [vmem:[%s1766_s28 + $0xf0] sm:$0xff] }
 0x156   : > { %v936_v43 = vadd.f32 %v1213_v39, %v423_v35  ;;  %v952_v44 = vadd.f32 %v1261_v40, %v439_v37 }
 0x157   : > { %v1215_v46 = vpop.f32.mrf.mxu0  ;;  %v1263_v48 = vpop.f32.mrf.mxu1 }
 0x158   : > { %968 = vst [vmem:[%s1766_s28 + $0x40] sm:$0xff] %v936_v43  ;;  %984 = vst [vmem:[%s1766_s28 + $0xc0] sm:$0xff] %v952_v44  ;;  %v1216_v49 = vadd.f32 %v1215_v46, %v1214_v41  ;;  %v1264_v50 = vadd.f32 %v1263_v48, %v1262_v42  ;;  %v430_v41 = vld [vmem:[%s1766_s28 + $0x78] sm:$0xff] }
 0x159   : > { %v1217_v51 = vpop.f32.mrf.mxu0  ;;  %v1265_v52 = vpop.f32.mrf.mxu1  ;;  %v446_v43 = vld [vmem:[%s1766_s28 + $0xf8] sm:$0xff] }
 0x15a   : > { %v937_v53 = vadd.f32 %v1216_v49, %v424_v45  ;;  %v953_v54 = vadd.f32 %v1264_v50, %v440_v47 }
 0x15b   : > { %v1218_v56 = vpop.f32.mrf.mxu0  ;;  %v1266_v58 = vpop.f32.mrf.mxu1 }
 0x15c   : > { %969 = vst [vmem:[%s1766_s28 + $0x48] sm:$0xff] %v937_v53  ;;  %985 = vst [vmem:[%s1766_s28 + $0xc8] sm:$0xff] %v953_v54  ;;  %v1219_v59 = vadd.f32 %v1218_v56, %v1217_v51  ;;  %v1267_v60 = vadd.f32 %v1266_v58, %v1265_v52 }
 0x15d   : > { %v1220_v61 = vpop.f32.mrf.mxu0  ;;  %v1268_v62 = vpop.f32.mrf.mxu1 }
 0x15e   : > { %v938_v63 = vadd.f32 %v1219_v59, %v425_v55  ;;  %v954_v0 = vadd.f32 %v1267_v60, %v441_v57 }
 0x15f   : > { %v1221_v2 = vpop.f32.mrf.mxu0  ;;  %v1269_v4 = vpop.f32.mrf.mxu1 }
 0x160   : > { %970 = vst [vmem:[%s1766_s28 + $0x50] sm:$0xff] %v938_v63  ;;  %986 = vst [vmem:[%s1766_s28 + $0xd0] sm:$0xff] %v954_v0  ;;  %v1222_v5 = vadd.f32 %v1221_v2, %v1220_v61  ;;  %v1270_v6 = vadd.f32 %v1269_v4, %v1268_v62 }
 0x161   : > { %v1223_v7 = vpop.f32.mrf.mxu0  ;;  %v1271_v8 = vpop.f32.mrf.mxu1 }
 0x162   : > { %v939_v9 = vadd.f32 %v1222_v5, %v426_v1  ;;  %v955_v10 = vadd.f32 %v1270_v6, %v442_v3 }
 0x163   : > { %v1224_v12 = vpop.f32.mrf.mxu0  ;;  %v1272_v14 = vpop.f32.mrf.mxu1 }
 0x164   : > { %971 = vst [vmem:[%s1766_s28 + $0x58] sm:$0xff] %v939_v9  ;;  %987 = vst [vmem:[%s1766_s28 + $0xd8] sm:$0xff] %v955_v10  ;;  %v1225_v15 = vadd.f32 %v1224_v12, %v1223_v7  ;;  %v1273_v16 = vadd.f32 %v1272_v14, %v1271_v8 }
 0x165   : > { %v1226_v17 = vpop.f32.mrf.mxu0  ;;  %v1274_v18 = vpop.f32.mrf.mxu1 }
 0x166   : > { %v940_v19 = vadd.f32 %v1225_v15, %v427_v11  ;;  %v956_v20 = vadd.f32 %v1273_v16, %v443_v13 }
 0x167   : > { %v1227_v22 = vpop.f32.mrf.mxu0  ;;  %v1275_v24 = vpop.f32.mrf.mxu1 }
 0x168   : > { %972 = vst [vmem:[%s1766_s28 + $0x60] sm:$0xff] %v940_v19  ;;  %988 = vst [vmem:[%s1766_s28 + $0xe0] sm:$0xff] %v956_v20  ;;  %v1228_v25 = vadd.f32 %v1227_v22, %v1226_v17  ;;  %v1276_v26 = vadd.f32 %v1275_v24, %v1274_v18 }
 0x169   : > { %v1229_v27 = vpop.f32.mrf.mxu0  ;;  %v1277_v28 = vpop.f32.mrf.mxu1 }
 0x16a   : > { %v941_v29 = vadd.f32 %v1228_v25, %v428_v21  ;;  %v957_v30 = vadd.f32 %v1276_v26, %v444_v23 }
 0x16b   : > { %v1230_v32 = vpop.f32.mrf.mxu0  ;;  %v1278_v34 = vpop.f32.mrf.mxu1 }
 0x16c   : > { %973 = vst [vmem:[%s1766_s28 + $0x68] sm:$0xff] %v941_v29  ;;  %989 = vst [vmem:[%s1766_s28 + $0xe8] sm:$0xff] %v957_v30  ;;  %v1231_v35 = vadd.f32 %v1230_v32, %v1229_v27  ;;  %v1279_v36 = vadd.f32 %v1278_v34, %v1277_v28 }
 0x16d   : > { %v1232_v37 = vpop.f32.mrf.mxu0  ;;  %v1280_v38 = vpop.f32.mrf.mxu1 }
 0x16e   : > { %v942_v39 = vadd.f32 %v1231_v35, %v429_v31  ;;  %v958_v40 = vadd.f32 %v1279_v36, %v445_v33 }
 0x16f   : > { %v1233_v42 = vpop.f32.mrf.mxu0  ;;  %v1281_v44 = vpop.f32.mrf.mxu1 }
 0x170   : > { %974 = vst [vmem:[%s1766_s28 + $0x70] sm:$0xff] %v942_v39  ;;  %990 = vst [vmem:[%s1766_s28 + $0xf0] sm:$0xff] %v958_v40  ;;  %v1234_v45 = vadd.f32 %v1233_v42, %v1232_v37  ;;  %v1282_v46 = vadd.f32 %v1281_v44, %v1280_v38 }
 0x172   : > { %v943_v47 = vadd.f32 %v1234_v45, %v430_v41  ;;  %v959_v48 = vadd.f32 %v1282_v46, %v446_v43 }
 0x174   : > { %975 = vst [vmem:[%s1766_s28 + $0x78] sm:$0xff] %v943_v47  ;;  %991 = vst [vmem:[%s1766_s28 + $0xf8] sm:$0xff] %v959_v48 }
 0x175   : > { %1465 = shalt.err (!%p1462_p13)
}
 0x176   : > { %s1466_s9 = scalar_lea.hbm %s1919_s23, 4096  ;;  %s1470_s5 = scalar_lea.hbm %s1987_s3, 8192 }
 0x177   : > { %p1467_p0 = scmp.ne.s32.totalorder %s1919_s23, %s1466_s9  ;;  %p1471_p3 = scmp.lt.s32.totalorder %s1919_s23, %s1987_s3 }
 0x178   : > { %p1472_p4 = scmp.lt.s32.totalorder %s1470_s5, %s1466_s9 }
 0x179   : > { %p1468_p1 = pnand %p1467_p0, %p1657_p7 }
 0x17a   : > { %p1473_p5 = por %p1472_p4, %p1471_p3 }
 0x17b   : > { %p1469_p2 = pneg %p1468_p1 }
 0x17d   : > { %p1474_p6 = pnand %p1473_p5, %p1469_p2 }
 0x17f   : > { %1477 = shalt.err (!%p1474_p6)
}
 0x180   : > { %s1563_s22 = smov 128   ;;  %s1564_s27 = smov 8  }
 0x181   : > { %1299 = dma.vmem_to_hbm [thread:$0]  (%p1657_p7), %s1921_s10, 4096, %s1919_s23, %s1927_s18, %s1563_s22, %s1563_s22, %s1564_s27  }
 0x182 PF: > { %p1305_p8 = scmp.ge.s32.totalorder %s1560_s21, 2  ;;  %s1021_s4 = sand.u32 1, %s1524_s12  }
 0x183   : > { %s1022_s29 = scalar_lea.sflag [#allocation4], %s1021_s4 }
 0x184   : > { %p1302_p9 = pnand %p1305_p8, %p1665_p12 }
 0x186   : > { %p1303_p10 = pneg %p1302_p9 }
 0x188   : > { %1519 = dma.done.wait (%p1303_p10), %s1022_s29, 4096  }
 0x189   : > { %1521 = vsyncadd (%p1303_p10), %s1022_s29, 4294963200  ;;  %s16_s21 = sadd.s32 1, %s1560_s21   ;;  %s1991_s12 = smov %s1528_s13 }
 0x18a   : > { %p13_p11 = scmp.ge.s32.totalorder %s16_s21, 6   ;;  %s1992_s13 = smov %s1532_s14 }
 0x18b   : > { %s1993_s14 = smov %s1670_s7  ;;  %s1994_s15 = smov %s1540_s16 }
 0x18c   : > { %s1995_s16 = smov %s1673_s8  ;;  %s1996_s17 = smov %s1552_s19 }
 0x18d   : > { %s1997_s18 = smov %s1556_s20  ;;  %s1998_s19 = smov %s2001_s24 }
 0x18e   : > { %s1999_s20 = smov %s2005_s25  ;;  %15 = sbr.rel (!%p13_p11) target bundleno = 6 (0x6), region = 117 }
 0x193   :  { %1027 = vsyncpa [#allocation4], 1 }
 0x194   :  { %1029 = vsyncpa [#allocation4 + $0x1], 1 }

// kernel: graph_convolution.2
= control target key start
LH: loop header
LB: loop body
LE: loop exit
PB: predicated region body
PF: predicated region fallthrough
CT: control target
= control target key end

     0   :  { %s1054_s9 = smov 0   ;;  %s1138_s0 = inlined_call_operand.vmem [shape: bf16[512,128], index: 0, kind: input, shape index: {}]   ;;  %s1139_s1 = inlined_call_operand.vmem [shape: bf16[128,128], index: 1, kind: input, shape index: {}]   ;;  %s1140_s2 = inlined_call_operand.vmem [shape: bf16[512,128], index: 2, kind: output, shape index: {}]  }
   0x1 LB: > { %s717_s10 = sadd.s32 4294967295, %s1037_s9   ;;  %p721_p0 = scmp.ge.s32.totalorder %s1037_s9, 1  ;;  %s1037_s9 = sphi %s1054_s9, %s12_s9  }
   0x2   : > { %p113_p1 = scmp.lt.s32.totalorder %s1037_s9, 3 }
   0x4   : > { %p114_p2 = pnand %p721_p0, %p113_p1 }
   0x5   : > { %s722_s13 = sshll.u32 (!%p114_p2), %s717_s10, 5 }
   0x6   : > { %117 = sbr.rel (%p114_p2) target bundleno = 270 (0x10e), region = 28  ;;  %p136_p3 = scmp.lt.s32.totalorder (!%p114_p2), %s722_s13, 63 }
   0xb   : > { %v1007_v0 = vld [vmem:[%s1139_s1 + $0x38] sm:$0xff]   ;;  %v1008_v1 = vld [vmem:[%s1139_s1 + $0x30] sm:$0xff]   ;;  %s1142_s13 = smov (!%p136_p3, %s722_s13), 63  ;;  %v1009_v2 = vld [vmem:[%s1139_s1 + $0x28] sm:$0xff]  }
   0xc   : > { %935 = vmatprep.subr.bf16.mxu0 %v1007_v0  ;;  %983 = vmatprep.subr.bf16.mxu1 %v1007_v0  ;;  %s723_s18 = sshll.u32 %s1142_s13, 2  ;;  %v1010_v3 = vld [vmem:[%s1139_s1 + $0x20] sm:$0xff]   ;;  %v1011_v6 = vld [vmem:[%s1139_s1 + $0x18] sm:$0xff]   ;;  %v1012_v7 = vld [vmem:[%s1139_s1 + $0x10] sm:$0xff]  }
   0xd   : > { %936 = vmatpush3.bf16.msra.mxu0 %v1007_v0  ;;  %991 = vmatpush3.bf16.msra.mxu1 %v1007_v0  ;;  %s1079_s21 = scalar_lea.vmem %s1138_s0, %s723_s18  ;;  %v1013_v8 = vld [vmem:[%s1139_s1 + $0x8] sm:$0xff]   ;;  %v1014_v9 = vld [vmem:[%s1139_s1] sm:$0xff]   ;;  %s1117_s6 = scalar_lea.vmem %s1140_s2, %s723_s18 }
   0xe   : > { %937 = vmatprep.subr.bf16.mxu0 %v1008_v1  ;;  %984 = vmatprep.subr.bf16.mxu1 %v1008_v1  ;;  %v1015_v4 = vld [vmem:[%s1079_s21] sm:$0xff]   ;;  %v1017_v10 = vld [vmem:[%s1079_s21 + $0x8] sm:$0xff]   ;;  %v1019_v12 = vld [vmem:[%s1079_s21 + $0x10] sm:$0xff]  }
   0xf   : > { %v1016_v5 = vld [vmem:[%s1079_s21 + $0x40] sm:$0xff]   ;;  %951 = vmatprep.mubr.bf16.mxu0 %v1015_v4  ;;  %v1018_v11 = vld [vmem:[%s1079_s21 + $0x48] sm:$0xff]   ;;  %v1020_v13 = vld [vmem:[%s1079_s21 + $0x50] sm:$0xff]  }
  0x10   : > { %967 = vmatprep.mubr.bf16.mxu1 %v1016_v5  ;;  %v1021_v14 = vld [vmem:[%s1079_s21 + $0x18] sm:$0xff]   ;;  %v1023_v16 = vld [vmem:[%s1079_s21 + $0x20] sm:$0xff]   ;;  %v1025_v18 = vld [vmem:[%s1079_s21 + $0x28] sm:$0xff]  }
  0x11   : > { %938 = vmatpush3.bf16.msra.mxu0 %v1008_v1  ;;  %992 = vmatpush3.bf16.msra.mxu1 %v1008_v1  ;;  %v1022_v15 = vld [vmem:[%s1079_s21 + $0x58] sm:$0xff]   ;;  %v1024_v17 = vld [vmem:[%s1079_s21 + $0x60] sm:$0xff]   ;;  %v1026_v19 = vld [vmem:[%s1079_s21 + $0x68] sm:$0xff]  }
  0x12   : > { %939 = vmatprep.subr.bf16.mxu0 %v1009_v2  ;;  %985 = vmatprep.subr.bf16.mxu1 %v1009_v2  ;;  %v1027_v20 = vld [vmem:[%s1079_s21 + $0x30] sm:$0xff]   ;;  %v1029_v22 = vld [vmem:[%s1079_s21 + $0x38] sm:$0xff]  }
  0x13   : > { %v1028_v21 = vld [vmem:[%s1079_s21 + $0x70] sm:$0xff]   ;;  %v1030_v23 = vld [vmem:[%s1079_s21 + $0x78] sm:$0xff]  }
  0x15   : > { %940 = vmatpush3.bf16.msra.mxu0 %v1009_v2  ;;  %993 = vmatpush3.bf16.msra.mxu1 %v1009_v2 }
  0x16   : > { %941 = vmatprep.subr.bf16.mxu0 %v1010_v3  ;;  %986 = vmatprep.subr.bf16.mxu1 %v1010_v3 }
  0x19   : > { %942 = vmatpush3.bf16.msra.mxu0 %v1010_v3  ;;  %994 = vmatpush3.bf16.msra.mxu1 %v1010_v3 }
  0x1a   : > { %943 = vmatprep.subr.bf16.mxu0 %v1011_v6  ;;  %987 = vmatprep.subr.bf16.mxu1 %v1011_v6 }
  0x1d   : > { %944 = vmatpush3.bf16.msra.mxu0 %v1011_v6  ;;  %995 = vmatpush3.bf16.msra.mxu1 %v1011_v6 }
  0x1e   : > { %945 = vmatprep.subr.bf16.mxu0 %v1012_v7  ;;  %988 = vmatprep.subr.bf16.mxu1 %v1012_v7 }
  0x21   : > { %946 = vmatpush3.bf16.msra.mxu0 %v1012_v7  ;;  %996 = vmatpush3.bf16.msra.mxu1 %v1012_v7 }
  0x22   : > { %947 = vmatprep.subr.bf16.mxu0 %v1013_v8  ;;  %989 = vmatprep.subr.bf16.mxu1 %v1013_v8 }
  0x25   : > { %948 = vmatpush3.bf16.msra.mxu0 %v1013_v8  ;;  %997 = vmatpush3.bf16.msra.mxu1 %v1013_v8 }
  0x26   : > { %949 = vmatprep.subr.bf16.mxu0 %v1014_v9  ;;  %990 = vmatprep.subr.bf16.mxu1 %v1014_v9 }
  0x29   : > { %950 = vmatpush3.bf16.msra.mxu0 %v1014_v9  ;;  %998 = vmatpush3.bf16.msra.mxu1 %v1014_v9 }
  0x2c   : > { %952 = vmatmul.mubr.bf16.vlgmr.msra.gmra.mxu0 %v1017_v10  ;;  %968 = vmatmul.mubr.bf16.vlgmr.msra.gmra.mxu1 %v1018_v11 }
  0x2d   : > { %955 = vmatprep.mubr.bf16.mxu0 %v1019_v12  ;;  %971 = vmatprep.mubr.bf16.mxu1 %v1020_v13 }
  0x34   : > { %956 = vmatmul.mubr.bf16.gmra.mxu0 %v1021_v14  ;;  %972 = vmatmul.mubr.bf16.gmra.mxu1 %v1022_v15 }
  0x35   : > { %959 = vmatprep.mubr.bf16.mxu0 %v1023_v16  ;;  %975 = vmatprep.mubr.bf16.mxu1 %v1024_v17 }
  0x3c   : > { %960 = vmatmul.mubr.bf16.gmra.mxu0 %v1025_v18  ;;  %976 = vmatmul.mubr.bf16.gmra.mxu1 %v1026_v19 }
  0x3d   : > { %963 = vmatprep.mubr.bf16.mxu0 %v1027_v20  ;;  %979 = vmatprep.mubr.bf16.mxu1 %v1028_v21 }
  0x44   : > { %964 = vmatmul.mubr.bf16.gmra.mxu0 %v1029_v22  ;;  %980 = vmatmul.mubr.bf16.gmra.mxu1 %v1030_v23 }
  0xec   : > { %v953_v24 = vpop.f32.mrf.mxu0  ;;  %v969_v25 = vpop.f32.mrf.mxu1 }
  0xee   : > { %v374_v26 = vpop.f32.mrf.mxu0  ;;  %v438_v27 = vpop.f32.mrf.mxu1 }
  0xf0   : > { %v954_v28 = vpop.f32.mrf.mxu0  ;;  %v970_v29 = vpop.f32.mrf.mxu1 }
  0xf1   : > { %v824_v30 = vpack.c.bf16 %v954_v28, %v953_v24  ;;  %v864_v31 = vpack.c.bf16 %v970_v29, %v969_v25 }
  0xf2   : > { %v377_v32 = vpop.f32.mrf.mxu0  ;;  %v441_v33 = vpop.f32.mrf.mxu1 }
  0xf3   : > { %896 = vst [vmem:[%s1117_s6 + $0x8] sm:$0xff] %v824_v30   ;;  %904 = vst [vmem:[%s1117_s6 + $0x48] sm:$0xff] %v864_v31   ;;  %v819_v34 = vpack.c.bf16 %v377_v32, %v374_v26  ;;  %v859_v35 = vpack.c.bf16 %v441_v33, %v438_v27 }
  0xf4   : > { %v957_v36 = vpop.f32.mrf.mxu0  ;;  %v973_v37 = vpop.f32.mrf.mxu1 }
  0xf5   : > { %820 = vst [vmem:[%s1117_s6] sm:$0xff] %v819_v34   ;;  %903 = vst [vmem:[%s1117_s6 + $0x40] sm:$0xff] %v859_v35  }
  0xf6   : > { %v390_v38 = vpop.f32.mrf.mxu0  ;;  %v454_v39 = vpop.f32.mrf.mxu1 }
  0xf8   : > { %v958_v40 = vpop.f32.mrf.mxu0  ;;  %v974_v41 = vpop.f32.mrf.mxu1 }
  0xf9   : > { %v834_v42 = vpack.c.bf16 %v958_v40, %v957_v36  ;;  %v874_v43 = vpack.c.bf16 %v974_v41, %v973_v37 }
  0xfa   : > { %v393_v44 = vpop.f32.mrf.mxu0  ;;  %v457_v45 = vpop.f32.mrf.mxu1 }
  0xfb   : > { %898 = vst [vmem:[%s1117_s6 + $0x18] sm:$0xff] %v834_v42   ;;  %906 = vst [vmem:[%s1117_s6 + $0x58] sm:$0xff] %v874_v43   ;;  %v829_v46 = vpack.c.bf16 %v393_v44, %v390_v38  ;;  %v869_v47 = vpack.c.bf16 %v457_v45, %v454_v39 }
  0xfc   : > { %v961_v48 = vpop.f32.mrf.mxu0  ;;  %v977_v49 = vpop.f32.mrf.mxu1 }
  0xfd   : > { %897 = vst [vmem:[%s1117_s6 + $0x10] sm:$0xff] %v829_v46   ;;  %905 = vst [vmem:[%s1117_s6 + $0x50] sm:$0xff] %v869_v47  }
  0xfe   : > { %v406_v50 = vpop.f32.mrf.mxu0  ;;  %v470_v51 = vpop.f32.mrf.mxu1 }
 0x100   : > { %v962_v52 = vpop.f32.mrf.mxu0  ;;  %v978_v53 = vpop.f32.mrf.mxu1 }
 0x101   : > { %v844_v54 = vpack.c.bf16 %v962_v52, %v961_v48  ;;  %v884_v55 = vpack.c.bf16 %v978_v53, %v977_v49 }
 0x102   : > { %v409_v56 = vpop.f32.mrf.mxu0  ;;  %v473_v57 = vpop.f32.mrf.mxu1 }
 0x103   : > { %900 = vst [vmem:[%s1117_s6 + $0x28] sm:$0xff] %v844_v54   ;;  %908 = vst [vmem:[%s1117_s6 + $0x68] sm:$0xff] %v884_v55   ;;  %v839_v58 = vpack.c.bf16 %v409_v56, %v406_v50  ;;  %v879_v59 = vpack.c.bf16 %v473_v57, %v470_v51 }
 0x104   : > { %v965_v60 = vpop.f32.mrf.mxu0  ;;  %v981_v61 = vpop.f32.mrf.mxu1 }
 0x105   : > { %899 = vst [vmem:[%s1117_s6 + $0x20] sm:$0xff] %v839_v58   ;;  %907 = vst [vmem:[%s1117_s6 + $0x60] sm:$0xff] %v879_v59  }
 0x106   : > { %v422_v62 = vpop.f32.mrf.mxu0  ;;  %v486_v63 = vpop.f32.mrf.mxu1 }
 0x108   : > { %v966_v0 = vpop.f32.mrf.mxu0  ;;  %v982_v1 = vpop.f32.mrf.mxu1 }
 0x109   : > { %v854_v2 = vpack.c.bf16 %v966_v0, %v965_v60  ;;  %v894_v3 = vpack.c.bf16 %v982_v1, %v981_v61 }
 0x10a   : > { %v425_v4 = vpop.f32.mrf.mxu0  ;;  %v489_v5 = vpop.f32.mrf.mxu1 }
 0x10b   : > { %902 = vst [vmem:[%s1117_s6 + $0x38] sm:$0xff] %v854_v2   ;;  %910 = vst [vmem:[%s1117_s6 + $0x78] sm:$0xff] %v894_v3   ;;  %v849_v6 = vpack.c.bf16 %v425_v4, %v422_v62  ;;  %v889_v7 = vpack.c.bf16 %v489_v5, %v486_v63 }
 0x10d   : > { %901 = vst [vmem:[%s1117_s6 + $0x30] sm:$0xff] %v849_v6   ;;  %909 = vst [vmem:[%s1117_s6 + $0x70] sm:$0xff] %v889_v7  }
 0x10e PF: > { %s12_s9 = sadd.s32 1, %s1037_s9  }
 0x10f   : > { %p9_p4 = scmp.ge.s32.totalorder %s12_s9, 4  }
 0x111   :  { %11 = sbr.rel (!%p9_p4) target bundleno = 1 (0x1), region = 58 }

</bundles_post_ra>
